<compile_context>
chip_gen: v7x
topology: tpu7x:2x2x1
jax: 0.10.0
libtpu: 0.0.40
codegen_flags: <defaults>
</compile_context>

<pallas_src>
import functools

import jax
import jax.numpy as jnp
from jax.experimental import pallas as pl
from jax.experimental.pallas import tpu as pltpu


def _shared_dropout_kernel(x_ref, bits_ref, o_ref, *, threshold, scale):
    x = x_ref[...]
    keep = bits_ref[...] >= jnp.uint32(threshold)
    # Native-dtype math (no f32 round trip); keep broadcasts along shared dims.
    o_ref[...] = jnp.where(keep, x * jnp.asarray(scale, dtype=x.dtype),
                           jnp.zeros_like(x))


def shared_dropout(x, key, *, r, batch_dim, training=True):
    """Dropout whose mask is shared along `batch_dim` (int, list of ints, or None)."""
    # Identity / degenerate paths never launch a kernel (no wasted HBM traffic).
    if (not training) or r == 0.0:
        return x
    if r >= 1.0:
        return jnp.zeros_like(x)

    ndim = x.ndim
    if batch_dim is None:
        shared_axes = set()
    else:
        if isinstance(batch_dim, int):
            batch_dim = [batch_dim]
        shared_axes = {bd % ndim for bd in batch_dim}

    # Merge adjacent dims with the same shared/non-shared role (free reshape)
    # -> lane-dense last block dim, fewer grid axes.
    runs = []  # [size, is_shared]
    for axis, size in enumerate(x.shape):
        flag = axis in shared_axes
        if runs and runs[-1][1] == flag:
            runs[-1][0] *= size
        else:
            runs.append([size, flag])
    if len(runs) < 2:
        runs.insert(0, [1, False])
    canon_shape = tuple(s for s, _ in runs)
    shared_flags = tuple(f for _, f in runs)
    m = len(canon_shape)

    xc = x.reshape(canon_shape)
    mask_shape = tuple(1 if f else s for s, f in zip(canon_shape, shared_flags))
    bits = jax.random.bits(key, shape=mask_shape, dtype=jnp.uint32)

    threshold = min(max(int(round(r * (2 ** 32))), 0), 2 ** 32 - 1)
    scale = 1.0 / (1.0 - r)

    # ---- Tile sizing: ~2 MiB x-blocks keep (in + out + bits) double-buffers
    # well inside scoped VMEM on every generation (v7x only has 64 MiB total).
    LANE, SUBLANE = 128, 8
    elem_bytes = jnp.dtype(x.dtype).itemsize
    target_elems = max((2 * 1024 * 1024) // elem_bytes, LANE)

    R2, L = canon_shape[-2], canon_shape[-1]
    if L <= target_elems or L % LANE != 0:
        bc = L  # full last dim (always legal)
    else:
        bc = max(LANE, (min(L, target_elems) // LANE) * LANE)
    rows_budget = max(1, target_elems // bc)
    if R2 <= rows_budget or R2 <= SUBLANE:
        br = R2  # full second-to-last dim
    else:
        br = max(SUBLANE, (rows_budget // SUBLANE) * SUBLANE)

    x_block = (1,) * (m - 2) + (br, bc)
    bits_block = tuple(1 if shared_flags[i] else x_block[i] for i in range(m))
    grid = tuple(canon_shape[:-2]) + (pl.cdiv(R2, br), pl.cdiv(L, bc))

    def x_map(*idx):
        return idx

    def bits_map(*idx):
        # Same bits tile for every step along shared axes -> mask is shared.
        return tuple(0 if f else i for i, f in zip(idx, shared_flags))

    cost = pl.CostEstimate(
        flops=2 * x.size,
        transcendentals=0,
        bytes_accessed=2 * x.size * elem_bytes + bits.size * 4,
    )

    compiler_params = None
    if jax.default_backend() == "tpu":
        compiler_params = pltpu.CompilerParams(
            dimension_semantics=("parallel",) * len(grid),
            vmem_limit_bytes=32 * 1024 * 1024,
        )

    out_c = pl.pallas_call(
        functools.partial(_shared_dropout_kernel,
                          threshold=threshold, scale=scale),
        out_shape=jax.ShapeDtypeStruct(canon_shape, x.dtype),
        grid=grid,
        in_specs=[
            pl.BlockSpec(x_block, x_map),
            pl.BlockSpec(bits_block, bits_map),
        ],
        out_specs=pl.BlockSpec(x_block, x_map),
        compiler_params=compiler_params,
        cost_estimate=cost,
    )(xc, bits)

    return out_c.reshape(x.shape)


if __name__ == "__main__":
    r = 0.25
    batch_dim = -3  # mask shared along this dim (openfold row/col dropout style)

    key = jax.random.PRNGKey(0)
    kx, kmask = jax.random.split(key)
    # Small shape: (batch=2, shared_dim=4, rows=8, cols=128)
    x = jax.random.normal(kx, (2, 4, 8, 128), dtype=jnp.float32)

    out = shared_dropout(x, kmask, r=r, batch_dim=batch_dim, training=True)
    out = jax.block_until_ready(out)

    # --- structural checks ---------------------------------------------------
    ratio = out / x  # x is Gaussian, essentially never exactly zero
    scale = 1.0 / (1.0 - r)
    is_zero = jnp.isclose(ratio, 0.0, atol=1e-6)
    is_scale = jnp.isclose(ratio, scale, rtol=1e-5, atol=1e-6)
    assert bool(jnp.all(is_zero | is_scale)), "mask values not in {0, 1/(1-r)}"
    assert bool(jnp.any(is_zero)) and bool(jnp.any(is_scale)), "degenerate mask"
    # keep probability roughly 1 - r
    drop_frac = float(jnp.mean(is_zero.astype(jnp.float32)))
    assert 0.10 < drop_frac < 0.40, f"drop fraction {drop_frac} far from r={r}"
    # mask shared along dim 1 (== batch_dim -3 for a 4-D tensor)
    assert bool(jnp.all(jnp.isclose(ratio, ratio[:, :1, :, :], rtol=1e-5, atol=1e-6))), \
        "mask not shared along batch_dim"

    # eval mode is the identity (no kernel launch)
    out_eval = shared_dropout(x, kmask, r=r, batch_dim=batch_dim, training=False)
    assert bool(jnp.all(out_eval == x)), "eval mode is not the identity"

    # bf16 smoke test (native-dtype path, no f32 round trip)
    out_bf16 = shared_dropout(x.astype(jnp.bfloat16), kmask, r=r,
                              batch_dim=batch_dim, training=True)
    out_bf16 = jax.block_until_ready(out_bf16)
    assert out_bf16.dtype == jnp.bfloat16 and out_bf16.shape == x.shape

    print("KERNEL_OK")
</pallas_src>

<mosaic_0001>
module attributes {stable_mosaic.version = 11 : i64} {
  func.func @_shared_dropout_kernel(%arg0: i32, %arg1: i32, %arg2: i32, %arg3: memref<1x4x1024xf32, #tpu.memory_space<vmem>>, %arg4: memref<1x1x1024xi32, #tpu.memory_space<vmem>>, %arg5: memref<1x4x1024xf32, #tpu.memory_space<vmem>>) attributes {dimension_semantics = [#tpu.dimension_semantics<arbitrary>, #tpu.dimension_semantics<arbitrary>, #tpu.dimension_semantics<arbitrary>], iteration_bounds = array<i64: 2, 1, 1>, scalar_prefetch = 0 : i64, scratch_operands = 0 : i64, tpu.core_type = #tpu.core_type<tc>, window_params = [{transform_indices = @transform_0, window_bounds = array<i64: 1, 4, 1024>}, {transform_indices = @transform_1, window_bounds = array<i64: 1, 1, 1024>}, {transform_indices = @transform_2, window_bounds = array<i64: 1, 4, 1024>}]} {
    %c0 = arith.constant 0 : index
    %c0_0 = arith.constant 0 : index
    %c0_1 = arith.constant 0 : index
    %0 = vector.load %arg3[%c0, %c0_0, %c0_1] : memref<1x4x1024xf32, #tpu.memory_space<vmem>>, vector<1x4x1024xf32>
    %c0_2 = arith.constant 0 : index
    %c0_3 = arith.constant 0 : index
    %c0_4 = arith.constant 0 : index
    %1 = vector.load %arg4[%c0_2, %c0_3, %c0_4] : memref<1x1x1024xi32, #tpu.memory_space<vmem>>, vector<1x1x1024xi32>
    %c1073741824_i32 = arith.constant 1073741824 : i32
    %2 = vector.broadcast %c1073741824_i32 : i32 to vector<1x1x1024xi32>
    %3 = arith.cmpi uge, %1, %2 : vector<1x1x1024xi32>
    %cst = arith.constant 1.33333337 : f32
    %4 = vector.broadcast %cst : f32 to vector<1x4x1024xf32>
    %5 = arith.mulf %0, %4 : vector<1x4x1024xf32>
    %cst_5 = arith.constant 0.000000e+00 : f32
    %6 = vector.broadcast %cst_5 : f32 to vector<1x4x1024xf32>
    %7 = vector.shape_cast %3 : vector<1x1x1024xi1> to vector<1x1x1024xi1>
    %8 = vector.broadcast %7 : vector<1x1x1024xi1> to vector<1x4x1024xi1>
    %9 = arith.select %8, %5, %6 : vector<1x4x1024xi1>, vector<1x4x1024xf32>
    %c0_6 = arith.constant 0 : index
    %c0_7 = arith.constant 0 : index
    %c0_8 = arith.constant 0 : index
    %10 = vector.load %arg5[%c0_6, %c0_7, %c0_8] : memref<1x4x1024xf32, #tpu.memory_space<vmem>>, vector<1x4x1024xf32>
    tpu.vector_store %arg5[%c0_6, %c0_7, %c0_8], %9 {strides = array<i32>} : memref<1x4x1024xf32, #tpu.memory_space<vmem>>, vector<1x4x1024xf32>,
    return
  }
  func.func @transform_0(%arg0: i32, %arg1: i32, %arg2: i32) -> (i32, i32, i32) {
    %c0_i32 = arith.constant 0 : i32
    return %arg0, %arg1, %arg2 : i32, i32, i32
  }
  func.func @transform_1(%arg0: i32, %arg1: i32, %arg2: i32) -> (i32, i32, i32) {
    %c0_i32 = arith.constant 0 : i32
    %c0_i32_0 = arith.constant 0 : i32
    return %arg0, %c0_i32, %arg2 : i32, i32, i32
  }
  func.func @transform_2(%arg0: i32, %arg1: i32, %arg2: i32) -> (i32, i32, i32) {
    %c0_i32 = arith.constant 0 : i32
    return %arg0, %arg1, %arg2 : i32, i32, i32
  }
}

</mosaic_0001>

<bundles_post_ra>
// kernel: tpu_custom_call.1
= control target key start
LH: loop header
LB: loop body
LE: loop exit
PB: predicated region body
PF: predicated region fallthrough
CT: control target
= control target key end

     0   :  { %7 = vsyncpa [#allocation3], 0  ;;  %s945_s0 = inlined_call_operand.hbm [shape: f32[2,4,1024], index: 0, kind: input, shape index: {}]   ;;  %s946_s1 = inlined_call_operand.hbm [shape: u32[2,1,1024], index: 1, kind: input, shape index: {}]   ;;  %s947_s2 = inlined_call_operand.hbm [shape: f32[2,4,1024], index: 2, kind: output, shape index: {}]  }
   0x1   :  { %9 = vsyncpa [#allocation3 + $0x1], 0 }
   0x2   :  { %10 = vsyncpa [#allocation6], 0 }
   0x3   :  { %12 = vsyncpa [#allocation6 + $0x1], 0 }
   0x4   :  { %13 = vsyncpa [#allocation4], 0 }
   0x5   :  { %15 = vsyncpa [#allocation4 + $0x1], 0  ;;  %s720_s9 = smov 0   ;;  %s722_s10 = smov 0  }
   0x6   :  { %s724_s11 = smov 0   ;;  %s726_s12 = smov 0  }
   0x7   :  { %s728_s13 = smov 0   ;;  %s730_s14 = smov 0  }
   0x8 LB: > { %s463_s15 = sadd.s32 4294967295, %s699_s14   ;;  %s464_s16 = sadd.s32 4294967294, %s699_s14   ;;  %s699_s14 = sphi %s730_s14, %s21_s14   ;;  %s695_s13 = sphi %s728_s13, %s967_s13   ;;  %s691_s12 = sphi %s726_s12, %s966_s12   ;;  %s687_s11 = sphi %s724_s11, %s965_s11   ;;  %s683_s10 = sphi %s722_s10, %s964_s10   ;;  %s679_s9 = sphi %s720_s9, %s963_s9  }
   0x9   : > { %s40_s17 = sadd.s32 1, %s695_s13  ;;  %s51_s18 = sadd.s32 1, %s687_s11 }
   0xa   : > { %p42_p0 = scmp.ge.s32.totalorder %s40_s17, 2  ;;  %p58_p1 = scmp.ne.s32.totalorder %s687_s11, %s683_s10 }
   0xb   : > { %p59_p2 = scmp.eq.s32.totalorder %s699_s14, 0  ;;  %p64_p3 = scmp.ne.s32.totalorder %s683_s10, %s679_s9 }
   0xc   : > { %s969_s17 = smov (%p42_p0, %s40_s17), 0  ;;  %p65_p5 = scmp.eq.s32.totalorder %s463_s15, 0 }
   0xd   : > { %p761_p4 = por %p59_p2, %p58_p1  ;;  %s44_s20 = ssub.s32 %s695_s13, %s969_s17 }
   0xe   : > { %p120_p6 = scmp.eq.s32.totalorder %s463_s15, 1  ;;  %p49_p7 = scmp.eq.s32.totalorder %s44_s20, 0 }
   0xf   : > { %p767_p8 = por %p65_p5, %p64_p3  ;;  %p126_p10 = scmp.eq.s32.totalorder %s464_s16, 1 }
  0x10   : > { %p771_p9 = por %p120_p6, %p58_p1  ;;  %p502_p13 = scmp.lt.s32.totalorder %s699_s14, 2 }
  0x11   : > { %s951_s21 = scalar_select %p767_p8, 1, 0 }
  0x12   : > { %s952_s22 = scalar_select %p771_p9, 1, 0 }
  0x13   : > { %s776_s23 = scalar_select %p49_p7, %s687_s11, %s51_s18  }
  0x14   : > { %p778_p11 = por %p126_p10, %p64_p3  ;;  %s785_s25 = sand.u32 1, %s687_s11  }
  0x15   : > { %s467_s26 = sshll.u32 %s785_s25, 5  ;;  %s482_s27 = sshll.u32 %s695_s13, 9 }
  0x16   : > { %s953_s24 = scalar_select %p778_p11, 1, 0 }
  0x17   : > { %s792_s30 = scalar_lea.hbm %s945_s0, %s482_s27  ;;  %s150_s3 = scalar_lea.vmem [#allocation2], %s467_s26 }
  0x18   : > { %s162_s4 = sshll.u32 %s150_s3, 4  ;;  %p798_p0 = pnand %p502_p13, %p761_p4  ;;  %s794_s4 = int_to_ptr.vmem [resolvable:$true] %s162_s4 }
  0x19   : > { %s147_s6 = scalar_lea.sflag [#allocation3], %s785_s25  ;;  %s553_s7 = scalar_lea.hbm %s792_s30, 512 }
  0x1a   : > { %p554_p3 = scmp.ne.s32.totalorder %s792_s30, %s553_s7  ;;  %p555_p5 = pneg %p798_p0 }
  0x1b   : > { %s558_s16 = scalar_lea.hbm %s945_s0, 1024  ;;  %p559_p4 = scmp.lt.u32.totalorder %s792_s30, %s945_s0 }
  0x1c   : > { %p556_p6 = pnand %p555_p5, %p554_p3  ;;  %p560_p10 = scmp.lt.u32.totalorder %s558_s16, %s553_s7 }
  0x1d   : > { %p562_p12 = scmp.lt.u32.totalorder %s553_s7, %s792_s30 }
  0x1e   : > { %p557_p7 = pneg %p556_p6  ;;  %p561_p13 = por %p560_p10, %p559_p4 }
  0x20   : > { %p563_p1 = por %p562_p12, %p561_p13 }
  0x22   : > { %p564_p2 = pnand %p563_p1, %p557_p7 }
  0x24   : > { %567 = shalt.err (!%p564_p2)
}
  0x25   : > { %s568_s20 = scalar_lea.vmem %s794_s4, 512  ;;  %s701_s26 = smov [#allocation2]  }
  0x26   : > { %p569_p3 = scmp.ne.s32.totalorder %s794_s4, %s568_s20  ;;  %s573_s27 = sshll.u32 %s701_s26, 4  ;;  %s574_s27 = int_to_ptr.vmem [resolvable:$false] %s573_s27 }
  0x27   : > { %s575_s28 = scalar_lea.vmem %s574_s27, 1024  ;;  %p576_p9 = scmp.lt.s32.totalorder %s794_s4, %s574_s27 }
  0x28   : > { %p571_p6 = pnand %p569_p3, %p555_p5  ;;  %p577_p4 = scmp.lt.s32.totalorder %s575_s28, %s568_s20 }
  0x2a   : > { %p572_p11 = pneg %p571_p6  ;;  %p578_p10 = por %p577_p4, %p576_p9 }
  0x2c   : > { %p579_p12 = pnand %p578_p10, %p572_p11 }
  0x2e   : > { %582 = shalt.err (!%p579_p12)
}
  0x2f   : > { %494 = dma.hbm_to_vmem [thread:$0]  (!%p798_p0), %s792_s30, 512, %s794_s4, %s147_s6  }
  0x30   : > { %p955_p1 = scmp.lt.s32.totalorder %s699_s14, 3  ;;  %p956_p2 = scmp.ge.s32.totalorder %s699_s14, 1 }
  0x31   : > { %s470_s3 = sshll.u32 %s785_s25, 3  ;;  %s483_s7 = sshll.u32 %s695_s13, 7 }
  0x32   : > { %p834_p7 = pnand %p956_p2, %p955_p1  ;;  %s843_s16 = scalar_lea.hbm %s946_s1, %s483_s7 }
  0x33   : > { %s173_s18 = scalar_lea.vmem [#allocation5], %s470_s3  ;;  %s170_s30 = scalar_lea.sflag [#allocation6], %s785_s25 }
  0x34   : > { %s957_s29 = scalar_select %p834_p7, 1, 0 }
  0x35   : > { %s183_s19 = sshll.u32 %s173_s18, 4  ;;  %s583_s4 = scalar_lea.hbm %s843_s16, 128  ;;  %s184_s19 = int_to_ptr.vmem [resolvable:$true] %s183_s19 }
  0x36   : > { %p584_p9 = scmp.ne.s32.totalorder %s843_s16, %s583_s4  ;;  %s588_s26 = scalar_lea.hbm %s946_s1, 256 }
  0x37   : > { %p589_p3 = scmp.lt.u32.totalorder %s843_s16, %s946_s1  ;;  %p590_p6 = scmp.lt.u32.totalorder %s588_s26, %s583_s4 }
  0x38   : > { %p586_p11 = pnand %p584_p9, %p555_p5  ;;  %p592_p10 = scmp.lt.u32.totalorder %s583_s4, %s843_s16 }
  0x39   : > { %p591_p4 = por %p590_p6, %p589_p3 }
  0x3a   : > { %p587_p13 = pneg %p586_p11 }
  0x3b   : > { %p593_p12 = por %p592_p10, %p591_p4 }
  0x3d   : > { %p594_p1 = pnand %p593_p12, %p587_p13 }
  0x3f   : > { %597 = shalt.err (!%p594_p1)
}
  0x40   : > { %s598_s25 = scalar_lea.vmem %s184_s19, 128  ;;  %s702_s3 = smov [#allocation5]  }
  0x41   : > { %p599_p2 = scmp.ne.s32.totalorder %s184_s19, %s598_s25  ;;  %s603_s7 = sshll.u32 %s702_s3, 4  ;;  %s604_s7 = int_to_ptr.vmem [resolvable:$false] %s603_s7 }
  0x42   : > { %s605_s8 = scalar_lea.vmem %s604_s7, 256  ;;  %p606_p8 = scmp.lt.s32.totalorder %s184_s19, %s604_s7 }
  0x43   : > { %p601_p9 = pnand %p599_p2, %p555_p5  ;;  %p607_p7 = scmp.lt.s32.totalorder %s605_s8, %s598_s25 }
  0x45   : > { %p602_p11 = pneg %p601_p9  ;;  %p608_p3 = por %p607_p7, %p606_p8 }
  0x47   : > { %p609_p6 = pnand %p608_p3, %p602_p11 }
  0x49   : > { %612 = shalt.err (!%p609_p6)
}
  0x4a   : > { %497 = dma.hbm_to_vmem [thread:$0]  (!%p798_p0), %s843_s16, 128, %s184_s19, %s170_s30  }
  0x4b   : > { %p958_p13 = scmp.ne.s32.totalorder %s957_s29, 0 }
  0x4c   : > { %s868_s15 = sand.u32 (!%p958_p13), 1, %s683_s10   ;;  %p959_p8 = scmp.ne.s32.totalorder (!%p958_p13), %s951_s21, 0 }
  0x4d   : > { %192 = sbr.rel (%p958_p13) target bundleno = 119 (0x77), region = 28  ;;  %s474_s18 = sshll.u32 (!%p958_p13), %s868_s15, 5 }
  0x4e   : > { %s195_s4 = scalar_lea.sflag (!%p958_p13), [#allocation3], %s868_s15  ;;  %s874_s6 = scalar_lea.vmem (!%p958_p13), [#allocation2], %s474_s18 }
  0x54   : > { %666 = dma.done.wait (%p959_p8), %s195_s4, 512  }
  0x55   : > { %668 = vsyncadd (%p959_p8), %s195_s4, 4294966784  ;;  %s475_s5 = sshll.u32 %s868_s15, 3  ;;  %s204_s29 = scalar_lea.sflag [#allocation6], %s868_s15 }
  0x56   : > { %s207_s16 = scalar_lea.vmem [#allocation5], %s475_s5 }
  0x57   : > { %670 = dma.done.wait (%p959_p8), %s204_s29, 128  }
  0x58   : > { %672 = vsyncadd (%p959_p8), %s204_s29, 4294967168  ;;  %v247_v0 = vlaneseq  ;;  %v236_v5 = vld [vmem:[%s874_s6] sm:$0xff]  ;;  %v237_v7 = vld [vmem:[%s874_s6 + $0x8] sm:$0xff]  ;;  %v703_v14 = vmov 0   ;;  %s232_s21 = scalar_lea.vmem [#allocation7], %s474_s18  ;;  %s484_s30 = sshll.u32 %s691_s12, 9 }
  0x59   : > { %v240_v6 = vld [vmem:[%s207_s16] sm:$0xff]  ;;  %v242_v11 = vmul.f32 1.3333334, %v236_v5  ;;  %v243_v12 = vmul.f32 1.3333334, %v237_v7  ;;  %v238_v13 = vld [vmem:[%s874_s6 + $0x10] sm:$0xff]  ;;  %s898_s27 = scalar_lea.hbm %s947_s2, %s484_s30 }
  0x5a   : > { %v248_v1 = vshrl.u32 %v247_v0, 7  ;;  %vm241_vm0 = vcmp.ge.u32.totalorder %v240_v6, 1073741824  ;;  %v244_v16 = vmul.f32 1.3333334, %v238_v13  ;;  %v239_v28 = vld [vmem:[%s874_s6 + $0x18] sm:$0xff]  ;;  %s346_s19 = sshll.u32 %s232_s21, 4  ;;  %s893_s19 = int_to_ptr.vmem [resolvable:$true] %s346_s19 }
  0x5b   : > { %v246_v15 = vsel %vm241_vm0, 1, %v703_v14  ;;  %v291_v21 = vcombine.high %v242_v11, %v242_v11  ;;  %v292_v24 = vcombine.high %v243_v12, %v243_v12  ;;  %v245_v37 = vmul.f32 1.3333334, %v239_v28  ;;  %s328_s28 = scalar_lea.sflag [#allocation4], %s868_s15  ;;  %s613_s25 = scalar_lea.vmem %s893_s19, 512 }
  0x5c   : > { %v249_v2 = vsub.s32 0, %v248_v1  ;;  %v253_v3 = vsub.s32 1, %v248_v1  ;;  %v257_v4 = vsub.s32 2, %v248_v1  ;;  %v261_v8 = vsub.s32 3, %v248_v1  ;;  %p614_p0 = scmp.ne.s32.totalorder %s893_s19, %s613_s25  ;;  %p960_p5 = scmp.ne.s32.totalorder %s952_s22, 0 }
  0x5d   : > { %v265_v9 = vsub.s32 4, %v248_v1  ;;  %v269_v10 = vsub.s32 5, %v248_v1  ;;  %v273_v17 = vsub.s32 6, %v248_v1  ;;  %v277_v18 = vsub.s32 7, %v248_v1  ;;  %s704_s12 = smov [#allocation7]  }
  0x5e   : > { %v250_v19 = vrot.slane %v246_v15, %v249_v2  ;;  %v254_v20 = vrot.slane %v246_v15, %v253_v3  ;;  %v258_v22 = vrot.slane %v246_v15, %v257_v4  ;;  %v262_v23 = vrot.slane %v246_v15, %v261_v8  ;;  %p615_p7 = pnand %p614_p0, %p960_p5  ;;  %s617_s3 = sshll.u32 %s704_s12, 4  ;;  %s618_s3 = int_to_ptr.vmem [resolvable:$false] %s617_s3 }
  0x5f   : > { %v266_v25 = vrot.slane %v246_v15, %v265_v9  ;;  %v270_v26 = vrot.slane %v246_v15, %v269_v10  ;;  %v293_v27 = vcombine.high %v244_v16, %v244_v16  ;;  %v274_v39 = vrot.slane %v246_v15, %v273_v17  ;;  %s619_s7 = scalar_lea.vmem %s618_s3, 1024  ;;  %p620_p10 = scmp.lt.s32.totalorder %s893_s19, %s618_s3 }
  0x60   : > { %vm279_vm1 = vcmp.eq.s32.totalorder %v250_v19, 1  ;;  %vm280_vm2 = vcmp.eq.s32.totalorder %v254_v20, 1  ;;  %vm281_vm3 = vcmp.eq.s32.totalorder %v258_v22, 1  ;;  %vm282_vm4 = vcmp.eq.s32.totalorder %v262_v23, 1  ;;  %p616_p4 = pneg %p615_p7  ;;  %p621_p12 = scmp.lt.s32.totalorder %s619_s7, %s613_s25 }
  0x61   : > { %v299_v29 = vsel %vm279_vm1, %v242_v11, 0.0  ;;  %v300_v30 = vsel %vm280_vm2, %v291_v21, 0.0  ;;  %v301_v31 = vsel %vm281_vm3, %v243_v12, 0.0  ;;  %v302_v33 = vsel %vm282_vm4, %v292_v24, 0.0 }
  0x62   : > { %v315_v32 = vcombine.low %v299_v29, %v300_v30  ;;  %vm283_vm5 = vcmp.eq.s32.totalorder %v266_v25, 1  ;;  %vm284_vm6 = vcmp.eq.s32.totalorder %v270_v26, 1  ;;  %v316_v34 = vcombine.low %v301_v31, %v302_v33  ;;  %p622_p1 = por %p621_p12, %p620_p10 }
  0x63   : > { %v303_v35 = vsel %vm283_vm5, %v244_v16, 0.0  ;;  %v304_v36 = vsel %vm284_vm6, %v293_v27, 0.0  ;;  %v278_v40 = vrot.slane %v246_v15, %v277_v18  ;;  %v294_v41 = vcombine.high %v245_v37, %v245_v37 }
  0x64   : > { %323 = vst [vmem:[%s232_s21] sm:$0xff] %v315_v32  ;;  %v317_v38 = vcombine.low %v303_v35, %v304_v36  ;;  %324 = vst [vmem:[%s232_s21 + $0x8] sm:$0xff] %v316_v34  ;;  %vm285_vm7 = vcmp.eq.s32.totalorder %v274_v39, 1  ;;  %p623_p2 = pnand %p622_p1, %p616_p4 }
  0x65   : > { %vm286_vm8 = vcmp.eq.s32.totalorder %v278_v40, 1  ;;  %v305_v42 = vsel %vm285_vm7, %v245_v37, 0.0 }
  0x66   : > { %325 = vst [vmem:[%s232_s21 + $0x10] sm:$0xff] %v317_v38  ;;  %v306_v43 = vsel %vm286_vm8, %v294_v41, 0.0 }
  0x67   : > { %v318_v44 = vcombine.low %v305_v42, %v306_v43 }
  0x69   : > { %326 = vst [vmem:[%s232_s21 + $0x18] sm:$0xff] %v318_v44 }
  0x6a   : > { %626 = shalt.err (!%p623_p2)
}
  0x6b   : > { %s627_s8 = scalar_lea.hbm %s898_s27, 512  ;;  %s631_s4 = scalar_lea.hbm %s947_s2, 1024 }
  0x6c   : > { %p628_p9 = scmp.ne.s32.totalorder %s898_s27, %s627_s8  ;;  %p632_p6 = scmp.lt.u32.totalorder %s898_s27, %s947_s2 }
  0x6d   : > { %p633_p13 = scmp.lt.u32.totalorder %s631_s4, %s627_s8  ;;  %p635_p0 = scmp.lt.u32.totalorder %s627_s8, %s898_s27 }
  0x6e   : > { %p629_p11 = pnand %p628_p9, %p960_p5 }
  0x6f   : > { %p634_p8 = por %p633_p13, %p632_p6 }
  0x70   : > { %p630_p3 = pneg %p629_p11 }
  0x71   : > { %p636_p7 = por %p635_p0, %p634_p8 }
  0x73   : > { %p637_p4 = pnand %p636_p7, %p630_p3 }
  0x75   : > { %640 = shalt.err (!%p637_p4)
}
  0x76   : > { %489 = dma.vmem_to_hbm [thread:$0]  (%p960_p5), %s893_s19, 512, %s898_s27, %s328_s28  }
  0x77 PF: > { %s358_s29 = sand.u32 1, %s679_s9   ;;  %p961_p10 = scmp.ne.s32.totalorder %s953_s24, 0 }
  0x78   : > { %p962_p12 = scmp.ge.s32.totalorder %s699_s14, 2  ;;  %s359_s16 = scalar_lea.sflag [#allocation4], %s358_s29 }
  0x7a   : > { %p499_p1 = pnand %p962_p12, %p961_p10 }
  0x7c   : > { %674 = dma.done.wait (!%p499_p1), %s359_s16, 512  }
  0x7d   : > { %676 = vsyncadd (!%p499_p1), %s359_s16, 4294966784  ;;  %s21_s14 = sadd.s32 1, %s699_s14   ;;  %s963_s9 = smov %s683_s10 }
  0x7e   : > { %p18_p2 = scmp.ge.s32.totalorder %s21_s14, 4   ;;  %s964_s10 = smov %s687_s11 }
  0x7f   : > { %s965_s11 = smov %s776_s23  ;;  %s966_s12 = smov %s695_s13 }
  0x80   : > { %s967_s13 = smov %s969_s17  ;;  %20 = sbr.rel (!%p18_p2) target bundleno = 8 (0x8), region = 86 }
  0x87   :  { %364 = vsyncpa [#allocation3], 1 }
  0x88   :  { %366 = vsyncpa [#allocation3 + $0x1], 1 }
  0x89   :  { %367 = vsyncpa [#allocation6], 1 }
  0x8a   :  { %369 = vsyncpa [#allocation6 + $0x1], 1 }
  0x8b   :  { %370 = vsyncpa [#allocation4], 1 }
  0x8c   :  { %372 = vsyncpa [#allocation4 + $0x1], 1 }

</bundles_post_ra>
